<compile_context>
chip_gen: v5e
topology: v5e:2x2
jax: 0.10.0
libtpu: 0.0.40
codegen_flags: <defaults>
</compile_context>

<pallas_src>
import math

import jax
import jax.numpy as jnp
from jax import lax
from jax.experimental import pallas as pl
from jax.experimental.pallas import tpu as pltpu


def _round_up(n: int, m: int) -> int:
    return ((n + m - 1) // m) * m


def _make_kernel(m: int, T: int, RB: int, W: int, R: int, y_mode: str, reps: int):
    inv_T = 1.0 / float(T)
    Wp = _round_up(W, 128)          # lane pad for the final (known-good) transpose
    masked_tail = (R % RB) != 0

    def kernel(x_ref, y_ref, o_ref):
        # x_ref : (RB, T)   rows of x (flattened leading dims), caller dtype
        # y_ref : (RBy, T)  RBy in {RB, C, 1} depending on broadcast mode
        # o_ref : (W, RB)   lane-dense output tile (shifts on sublanes)
        x = x_ref[...].astype(jnp.float32)                      # (RB, T)
        yb = y_ref[...].astype(jnp.float32)                     # (RBy, T)
        if y_mode == "tile":
            # TODO(synk): a per-channel MXU cross term would avoid materializing
            # this (RB, T) broadcast copy of y in VMEM.
            yb = jnp.tile(yb, (reps, 1))

        # Center y once (shared by every shift) and its sum of squares.
        yc = yb - jnp.mean(yb, axis=-1, keepdims=True)
        y_ss = jnp.sum(yc * yc, axis=-1, keepdims=True)         # (RBy', 1)

        # Zero-extend yc by m on each side: window w of the *padded* x against
        # yc equals the *unpadded* x against ycp at static lane offset 2m - w,
        # so x never needs an HBM or VMEM halo.
        if m > 0:
            zpad = jnp.zeros((yc.shape[0], m), jnp.float32)
            ycp = jnp.concatenate([zpad, yc, zpad], axis=-1)    # (RBy', T + 2m)
        else:
            ycp = yc

        # ---- batched per-window normalisation --------------------------------
        # Window w of the zero-padded x keeps x[max(0, w-m) : T + min(0, w-m)].
        # Its sum / sum-of-squares are the full-row sums minus the sums of the
        # excluded edge samples; all W exclusion sums come from one tiny MXU
        # matmul against a static 0/1 matrix instead of W running updates.
        s_full = jnp.sum(x, axis=-1, keepdims=True)             # (RB, 1)
        ss_full = jnp.sum(x * x, axis=-1, keepdims=True)        # x*x not kept live
        if m > 0:
            # cols 0..m-1  : last  m samples (tail, dropped when w < m)
            # cols m..2m-1 : first m samples (head, dropped when w > m)
            edges = jnp.concatenate([x[:, T - m:], x[:, :m]], axis=-1)   # (RB, 2m)
            row = lax.broadcasted_iota(jnp.int32, (2 * m, W), 0)
            col = lax.broadcasted_iota(jnp.int32, (2 * m, W), 1)
            drop = ((row < m) & (row >= col)) | ((row >= m) & (row < col))
            drop = drop.astype(jnp.float32)                     # (2m, W)
            s1 = s_full - jnp.dot(edges, drop,
                                  preferred_element_type=jnp.float32)
            s2 = ss_full - jnp.dot(edges * edges, drop,
                                   preferred_element_type=jnp.float32)
        else:
            s1, s2 = s_full, ss_full
        # NOTE: s2 - s1^2/T can cancel for inputs with a large DC offset relative
        # to their std (the reference centers x explicitly); fine for whitened
        # GW-style data.
        x_var = s2 - s1 * s1 * inv_T                            # (RB, W)

        # ---- cross term -------------------------------------------------------
        # numerator: sum_t (x_w - mean(x_w)) * yc == sum_t x_w * yc  (yc sums to 0)
        if y_mode == "bcast1":
            # Single MXU pass: (RB, T) x (T, W) against W shifted copies of the
            # one centered-y row; result is already lane-packed as (RB, W).
            # TODO(synk): for very large max_shift build/consume the shift matrix
            # in chunks (lax.fori_loop) instead of a full static unroll.
            ys = jnp.concatenate(
                [ycp[:, 2 * m - w:2 * m - w + T] for w in range(W)], axis=0)
            corr = lax.dot_general(
                x, ys,
                dimension_numbers=(((1,), (1,)), ((), ())),
                preferred_element_type=jnp.float32)             # (RB, W)
        else:
            # Per-row y: one VPU multiply + lane reduction per shift (inherent).
            # Columns are collected and packed with a single concatenate - no
            # masked single-lane stores.  The misaligned ycp slice costs one XLU
            # rotation per shift, the same as an explicit rolling pltpu.roll
            # buffer would.
            cols = [jnp.sum(x * ycp[:, 2 * m - w:2 * m - w + T],
                            axis=-1, keepdims=True) for w in range(W)]
            corr = jnp.concatenate(cols, axis=-1)               # (RB, W)

        norm = x_var * y_ss                                     # (.,1) broadcasts
        res = corr * lax.rsqrt(norm)                            # one EUP pass

        if masked_tail:
            # Rows past R in the last (partial) tile hold garbage (stale VMEM);
            # zero them so no NaN/Inf reaches the output.
            base = pl.program_id(0) * RB
            rid = lax.broadcasted_iota(jnp.int32, (RB, W), 0)
            res = jnp.where(rid < (R - base), res, 0.0)

        # Lane-dense store: one small padded transpose, one dense (W, RB) store.
        # (Pad kept at 128 lanes - a known-good transpose shape; shrinking it to
        #  round_up(W, 8) is a follow-up pending a pl.lower_as_mlir check.)
        if Wp != W:
            res = jnp.concatenate(
                [res, jnp.zeros((res.shape[0], Wp - W), jnp.float32)], axis=-1)
        res_t = jnp.transpose(res, (1, 0))                      # (Wp, RB)
        o_ref[...] = res_t[:W, :].astype(o_ref.dtype)

    return kernel


def shifted_pearson_correlation(x, y, max_shift: int):
    """Pallas equivalent of ml4gw ShiftedPearsonCorrelation(max_shift)(x, y)."""
    x = jnp.asarray(x)
    y = jnp.asarray(y)
    if x.ndim > 3 or x.ndim < 1:
        raise ValueError(f"x must have 1-3 dims, got {x.ndim}")
    if y.ndim > x.ndim or y.ndim < 1:
        raise ValueError(f"y must have 1..x.ndim dims, got {y.ndim} / {x.ndim}")
    for d in range(1, y.ndim + 1):
        if y.shape[-d] != x.shape[-d]:
            raise ValueError(
                f"x and y must match on trailing dims, got {x.shape} / {y.shape}")

    m = int(max_shift)
    if m < 0:
        raise ValueError("max_shift must be >= 0")
    W = 2 * m + 1
    T = x.shape[-1]
    lead = x.shape[:-1]
    R = math.prod(lead)                      # flattened rows (B*C)

    out_dtype = jnp.result_type(x.dtype, y.dtype)
    if not jnp.issubdtype(out_dtype, jnp.floating):
        out_dtype = jnp.float32

    # --- per-generation VMEM budget (~96 MiB on v5e/v6e, ~48 MiB on v7x) ------
    try:
        vmem_cap = int(pltpu.get_tpu_info().vmem_capacity_bytes)
    except Exception:                        # conservative fallback
        vmem_cap = 64 * 1024 * 1024
    vmem_limit = int(min((vmem_cap * 3) // 4, 112 * 1024 * 1024))

    # --- row tiling over the flattened leading dims ----------------------------
    # The output lane dim must be a multiple of 128 (or the full R), so tiles
    # are the whole problem when small and 128/256-row slabs otherwise; >= 2
    # grid steps whenever R >= 256 keeps both v7x TensorCores busy.
    itemsize = jnp.dtype(x.dtype).itemsize
    per_row = (T + 2 * m) * 8 + 4 * T * itemsize + 512   # f32 x + ycp + dbl-buffered inputs
    cap_rows = max(8, (((3 * vmem_limit) // 4) // per_row) // 8 * 8)

    if R <= 128:
        RB = R                               # single tile (block dims == full dims)
    elif R % 128 == 0:
        RB = 256 if (R % 256 == 0 and R >= 512 and cap_rows >= 256) else 128
        if cap_rows < 128:
            # TODO(synk): add a T grid axis with running corr/s1/s2 accumulators
            # for timeseries too long for a 128-row tile; for now keep 128 rows
            # and rely on the raised VMEM limit.
            RB = 128
    elif R <= cap_rows:
        RB = R                               # one dense tile, no partial blocks
    else:
        RB = 128                             # partial last tile, masked in-kernel

    grid = (pl.cdiv(R, RB),)

    x2d = x.reshape(R, T)                    # free reshape: no HBM pad / copy
    Ry = math.prod(y.shape[:-1])

    # y is passed at its natural rank with a constant index_map; broadcasting
    # over batch / channel happens in VMEM, not as a materialized HBM copy.
    if Ry == R:
        y2d = y.reshape(R, T)
        y_mode, reps = "row", 1
        y_spec = pl.BlockSpec((RB, T), lambda i: (i, 0))
    elif Ry == 1:
        y2d = y.reshape(1, T)
        y_mode, reps = "bcast1", 1
        y_spec = pl.BlockSpec((1, T), lambda i: (0, 0))
    elif RB % Ry == 0:
        # Channel-aligned tiles: tile starts are multiples of RB and RB % C == 0.
        y2d = y.reshape(Ry, T)
        y_mode, reps = "tile", RB // Ry
        y_spec = pl.BlockSpec((Ry, T), lambda i: (0, 0))
    else:
        # Rare corner (row tile not a channel multiple): broadcast only y.
        y2d = jnp.broadcast_to(y, lead + (T,)).reshape(R, T)
        y_mode, reps = "row", 1
        y_spec = pl.BlockSpec((RB, T), lambda i: (i, 0))

    out = pl.pallas_call(
        _make_kernel(m, T, RB, W, R, y_mode, reps),
        out_shape=jax.ShapeDtypeStruct((W, R), out_dtype),
        grid_spec=pltpu.PrefetchScalarGridSpec(
            num_scalar_prefetch=0,
            grid=grid,
            in_specs=[
                # TODO(synk): if a trace shows exposed input DMA after the compute
                # slimming, add pipeline_mode=pl.Buffered(3) on this spec.
                pl.BlockSpec((RB, T), lambda i: (i, 0)),
                y_spec,
            ],
            out_specs=pl.BlockSpec((W, RB), lambda i: (0, i)),
        ),
        compiler_params=pltpu.CompilerParams(
            dimension_semantics=("parallel",),
            vmem_limit_bytes=vmem_limit,
        ),
    )(x2d, y2d)

    # (W, R) -> (W, *lead) is a pure reshape (rows are already lane-ordered).
    return out.reshape((W,) + lead)


def _reference(x, y, max_shift: int):
    """Pure-JAX mirror of the PyTorch forward (pad -> unfold -> center -> corr)."""
    T = x.shape[-1]
    W = 2 * max_shift + 1
    pad_cfg = [(0, 0)] * (x.ndim - 1) + [(max_shift, max_shift)]
    xp = jnp.pad(x, pad_cfg)
    xw = jnp.stack([xp[..., w:w + T] for w in range(W)], axis=0)
    xw = xw - xw.mean(-1, keepdims=True)
    yc = y - y.mean(-1, keepdims=True)
    corr = (xw * yc).sum(-1)
    norm = (xw ** 2).sum(-1) * (yc ** 2).sum(-1)
    return corr / jnp.sqrt(norm)


if __name__ == "__main__":
    key = jax.random.PRNGKey(0)
    kx, ky, kc, kb, kw = jax.random.split(key, 5)

    B, C, T = 2, 4, 256
    max_shift = 4
    W = 2 * max_shift + 1

    x = jax.random.normal(kx, (B, C, T), dtype=jnp.float32)

    # 1) y with the same shape as x ("row" mode, VPU shift loop).
    y_full = jax.random.normal(ky, (B, C, T), dtype=jnp.float32)
    out = jax.block_until_ready(shifted_pearson_correlation(x, y_full, max_shift))
    exp = _reference(x, y_full, max_shift)
    assert out.shape == (W, B, C), out.shape
    assert jnp.allclose(out, exp, rtol=1e-4, atol=1e-4), \
        float(jnp.max(jnp.abs(out - exp)))

    # 2) y broadcast over batch and channel ("bcast1", MXU cross term).
    y_1d = jax.random.normal(kb, (T,), dtype=jnp.float32)
    out1 = jax.block_until_ready(shifted_pearson_correlation(x, y_1d, max_shift))
    exp1 = _reference(x, y_1d, max_shift)
    assert out1.shape == (W, B, C), out1.shape
    assert jnp.allclose(out1, exp1, rtol=1e-4, atol=1e-4), \
        float(jnp.max(jnp.abs(out1 - exp1)))

    # 3) y per channel, broadcast over batch ("tile" mode).
    y_ch = jax.random.normal(kc, (C, T), dtype=jnp.float32)
    out2 = jax.block_until_ready(shifted_pearson_correlation(x, y_ch, max_shift))
    exp2 = _reference(x, y_ch, max_shift)
    assert out2.shape == (W, B, C), out2.shape
    assert jnp.allclose(out2, exp2, rtol=1e-4, atol=1e-4), \
        float(jnp.max(jnp.abs(out2 - exp2)))

    # 4) Wider 2-D case exercising a 2-step "parallel" grid (R=256 -> RB=128).
    x_wide = jax.random.normal(kw, (256, T), dtype=jnp.float32)
    out3 = jax.block_until_ready(shifted_pearson_correlation(x_wide, y_1d, max_shift))
    exp3 = _reference(x_wide, y_1d, max_shift)
    assert out3.shape == (W, 256), out3.shape
    assert jnp.allclose(out3, exp3, rtol=1e-4, atol=1e-4), \
        float(jnp.max(jnp.abs(out3 - exp3)))

    print("KERNEL_OK")
</pallas_src>

<mosaic_0001>
module attributes {stable_mosaic.version = 11 : i64} {
  func.func @kernel(%arg0: i32, %arg1: memref<8x256xf32, #tpu.memory_space<vmem>>, %arg2: memref<8x256xf32, #tpu.memory_space<vmem>>, %arg3: memref<9x8xf32, #tpu.memory_space<vmem>>) attributes {dimension_semantics = [#tpu.dimension_semantics<parallel>], iteration_bounds = array<i64: 1>, scalar_prefetch = 0 : i64, scratch_operands = 0 : i64, tpu.core_type = #tpu.core_type<tc>, window_params = [{transform_indices = @transform_0, window_bounds = array<i64: 8, 256>}, {transform_indices = @transform_1, window_bounds = array<i64: 8, 256>}, {transform_indices = @transform_2, window_bounds = array<i64: 9, 8>}]} {
    %c0 = arith.constant 0 : index
    %c0_0 = arith.constant 0 : index
    %0 = vector.load %arg1[%c0, %c0_0] : memref<8x256xf32, #tpu.memory_space<vmem>>, vector<8x256xf32>
    %c0_1 = arith.constant 0 : index
    %c0_2 = arith.constant 0 : index
    %1 = vector.load %arg2[%c0_1, %c0_2] : memref<8x256xf32, #tpu.memory_space<vmem>>, vector<8x256xf32>
    %cst = arith.constant dense<0.000000e+00> : vector<8xf32>
    %2 = vector.multi_reduction <add>, %1, %cst [1] : vector<8x256xf32> to vector<8xf32>
    %3 = vector.shape_cast %2 : vector<8xf32> to vector<8x1xf32>
    %cst_3 = arith.constant 2.560000e+02 : f32
    %4 = vector.broadcast %cst_3 : f32 to vector<8x1xf32>
    %5 = arith.divf %3, %4 : vector<8x1xf32>
    %6 = vector.broadcast %5 : vector<8x1xf32> to vector<8x256xf32>
    %7 = arith.subf %1, %6 : vector<8x256xf32>
    %8 = arith.mulf %7, %7 : vector<8x256xf32>
    %cst_4 = arith.constant dense<0.000000e+00> : vector<8xf32>
    %9 = vector.multi_reduction <add>, %8, %cst_4 [1] : vector<8x256xf32> to vector<8xf32>
    %10 = vector.shape_cast %9 : vector<8xf32> to vector<8x1xf32>
    %cst_5 = arith.constant 0.000000e+00 : f32
    %11 = vector.broadcast %cst_5 : f32 to vector<8x4xf32>
    %12 = tpu.concatenate %11, %7, %11 in 1 : vector<8x4xf32>, vector<8x256xf32>, vector<8x4xf32> -> vector<8x264xf32>
    %cst_6 = arith.constant dense<0.000000e+00> : vector<8xf32>
    %13 = vector.multi_reduction <add>, %0, %cst_6 [1] : vector<8x256xf32> to vector<8xf32>
    %14 = vector.shape_cast %13 : vector<8xf32> to vector<8x1xf32>
    %15 = arith.mulf %0, %0 : vector<8x256xf32>
    %cst_7 = arith.constant dense<0.000000e+00> : vector<8xf32>
    %16 = vector.multi_reduction <add>, %15, %cst_7 [1] : vector<8x256xf32> to vector<8xf32>
    %17 = vector.shape_cast %16 : vector<8xf32> to vector<8x1xf32>
    %18 = vector.extract_strided_slice %0 {offsets = [0, 252], sizes = [8, 4], strides = [1, 1]} : vector<8x256xf32> to vector<8x4xf32>
    %19 = vector.extract_strided_slice %0 {offsets = [0, 0], sizes = [8, 4], strides = [1, 1]} : vector<8x256xf32> to vector<8x4xf32>
    %20 = tpu.concatenate %18, %19 in 1 : vector<8x4xf32>, vector<8x4xf32> -> vector<8x8xf32>
    %21 = tpu.iota {dimensions = array<i32: 0>} : vector<8x9xi32>
    %22 = tpu.iota {dimensions = array<i32: 1>} : vector<8x9xi32>
    %c4_i32 = arith.constant 4 : i32
    %23 = vector.broadcast %c4_i32 : i32 to vector<8x9xi32>
    %24 = arith.cmpi slt, %21, %23 : vector<8x9xi32>
    %25 = arith.cmpi sge, %21, %22 : vector<8x9xi32>
    %26 = arith.andi %24, %25 : vector<8x9xi1>
    %c4_i32_8 = arith.constant 4 : i32
    %27 = vector.broadcast %c4_i32_8 : i32 to vector<8x9xi32>
    %28 = arith.cmpi sge, %21, %27 : vector<8x9xi32>
    %29 = arith.cmpi slt, %21, %22 : vector<8x9xi32>
    %30 = arith.andi %28, %29 : vector<8x9xi1>
    %31 = arith.ori %26, %30 : vector<8x9xi1>
    %32 = arith.extui %31 : vector<8x9xi1> to vector<8x9xi32>
    %33 = arith.sitofp %32 : vector<8x9xi32> to vector<8x9xf32>
    %cst_9 = arith.constant dense<0.000000e+00> : vector<8x9xf32>
    %34 = tpu.matmul %20, %33, %cst_9 {dimension_numbers = #tpu.dot_dimension_numbers<[1], [0], [0], [1], [0, 0, 1, 1], [], []>} : vector<8x8xf32>, vector<8x9xf32>, vector<8x9xf32> -> vector<8x9xf32>
    %35 = vector.broadcast %14 : vector<8x1xf32> to vector<8x9xf32>
    %36 = arith.subf %35, %34 : vector<8x9xf32>
    %37 = arith.mulf %20, %20 : vector<8x8xf32>
    %cst_10 = arith.constant dense<0.000000e+00> : vector<8x9xf32>
    %38 = tpu.matmul %37, %33, %cst_10 {dimension_numbers = #tpu.dot_dimension_numbers<[1], [0], [0], [1], [0, 0, 1, 1], [], []>} : vector<8x8xf32>, vector<8x9xf32>, vector<8x9xf32> -> vector<8x9xf32>
    %39 = vector.broadcast %17 : vector<8x1xf32> to vector<8x9xf32>
    %40 = arith.subf %39, %38 : vector<8x9xf32>
    %41 = arith.mulf %36, %36 : vector<8x9xf32>
    %cst_11 = arith.constant 3.906250e-03 : f32
    %42 = vector.broadcast %cst_11 : f32 to vector<8x9xf32>
    %43 = arith.mulf %41, %42 : vector<8x9xf32>
    %44 = arith.subf %40, %43 : vector<8x9xf32>
    %45 = vector.extract_strided_slice %12 {offsets = [0, 8], sizes = [8, 256], strides = [1, 1]} : vector<8x264xf32> to vector<8x256xf32>
    %46 = arith.mulf %0, %45 : vector<8x256xf32>
    %cst_12 = arith.constant dense<0.000000e+00> : vector<8xf32>
    %47 = vector.multi_reduction <add>, %46, %cst_12 [1] : vector<8x256xf32> to vector<8xf32>
    %48 = vector.shape_cast %47 : vector<8xf32> to vector<8x1xf32>
    %49 = vector.extract_strided_slice %12 {offsets = [0, 7], sizes = [8, 256], strides = [1, 1]} : vector<8x264xf32> to vector<8x256xf32>
    %50 = arith.mulf %0, %49 : vector<8x256xf32>
    %cst_13 = arith.constant dense<0.000000e+00> : vector<8xf32>
    %51 = vector.multi_reduction <add>, %50, %cst_13 [1] : vector<8x256xf32> to vector<8xf32>
    %52 = vector.shape_cast %51 : vector<8xf32> to vector<8x1xf32>
    %53 = vector.extract_strided_slice %12 {offsets = [0, 6], sizes = [8, 256], strides = [1, 1]} : vector<8x264xf32> to vector<8x256xf32>
    %54 = arith.mulf %0, %53 : vector<8x256xf32>
    %cst_14 = arith.constant dense<0.000000e+00> : vector<8xf32>
    %55 = vector.multi_reduction <add>, %54, %cst_14 [1] : vector<8x256xf32> to vector<8xf32>
    %56 = vector.shape_cast %55 : vector<8xf32> to vector<8x1xf32>
    %57 = vector.extract_strided_slice %12 {offsets = [0, 5], sizes = [8, 256], strides = [1, 1]} : vector<8x264xf32> to vector<8x256xf32>
    %58 = arith.mulf %0, %57 : vector<8x256xf32>
    %cst_15 = arith.constant dense<0.000000e+00> : vector<8xf32>
    %59 = vector.multi_reduction <add>, %58, %cst_15 [1] : vector<8x256xf32> to vector<8xf32>
    %60 = vector.shape_cast %59 : vector<8xf32> to vector<8x1xf32>
    %61 = vector.extract_strided_slice %12 {offsets = [0, 4], sizes = [8, 256], strides = [1, 1]} : vector<8x264xf32> to vector<8x256xf32>
    %62 = arith.mulf %0, %61 : vector<8x256xf32>
    %cst_16 = arith.constant dense<0.000000e+00> : vector<8xf32>
    %63 = vector.multi_reduction <add>, %62, %cst_16 [1] : vector<8x256xf32> to vector<8xf32>
    %64 = vector.shape_cast %63 : vector<8xf32> to vector<8x1xf32>
    %65 = vector.extract_strided_slice %12 {offsets = [0, 3], sizes = [8, 256], strides = [1, 1]} : vector<8x264xf32> to vector<8x256xf32>
    %66 = arith.mulf %0, %65 : vector<8x256xf32>
    %cst_17 = arith.constant dense<0.000000e+00> : vector<8xf32>
    %67 = vector.multi_reduction <add>, %66, %cst_17 [1] : vector<8x256xf32> to vector<8xf32>
    %68 = vector.shape_cast %67 : vector<8xf32> to vector<8x1xf32>
    %69 = vector.extract_strided_slice %12 {offsets = [0, 2], sizes = [8, 256], strides = [1, 1]} : vector<8x264xf32> to vector<8x256xf32>
    %70 = arith.mulf %0, %69 : vector<8x256xf32>
    %cst_18 = arith.constant dense<0.000000e+00> : vector<8xf32>
    %71 = vector.multi_reduction <add>, %70, %cst_18 [1] : vector<8x256xf32> to vector<8xf32>
    %72 = vector.shape_cast %71 : vector<8xf32> to vector<8x1xf32>
    %73 = vector.extract_strided_slice %12 {offsets = [0, 1], sizes = [8, 256], strides = [1, 1]} : vector<8x264xf32> to vector<8x256xf32>
    %74 = arith.mulf %0, %73 : vector<8x256xf32>
    %cst_19 = arith.constant dense<0.000000e+00> : vector<8xf32>
    %75 = vector.multi_reduction <add>, %74, %cst_19 [1] : vector<8x256xf32> to vector<8xf32>
    %76 = vector.shape_cast %75 : vector<8xf32> to vector<8x1xf32>
    %77 = vector.extract_strided_slice %12 {offsets = [0, 0], sizes = [8, 256], strides = [1, 1]} : vector<8x264xf32> to vector<8x256xf32>
    %78 = arith.mulf %0, %77 : vector<8x256xf32>
    %cst_20 = arith.constant dense<0.000000e+00> : vector<8xf32>
    %79 = vector.multi_reduction <add>, %78, %cst_20 [1] : vector<8x256xf32> to vector<8xf32>
    %80 = vector.shape_cast %79 : vector<8xf32> to vector<8x1xf32>
    %81 = tpu.concatenate %48, %52, %56, %60, %64, %68, %72, %76, %80 in 1 : vector<8x1xf32>, vector<8x1xf32>, vector<8x1xf32>, vector<8x1xf32>, vector<8x1xf32>, vector<8x1xf32>, vector<8x1xf32>, vector<8x1xf32>, vector<8x1xf32> -> vector<8x9xf32>
    %82 = vector.broadcast %10 : vector<8x1xf32> to vector<8x9xf32>
    %83 = arith.mulf %44, %82 : vector<8x9xf32>
    %84 = math.rsqrt %83 : vector<8x9xf32>
    %85 = arith.mulf %81, %84 : vector<8x9xf32>
    %cst_21 = arith.constant 0.000000e+00 : f32
    %86 = vector.broadcast %cst_21 : f32 to vector<8x119xf32>
    %87 = tpu.concatenate %85, %86 in 1 : vector<8x9xf32>, vector<8x119xf32> -> vector<8x128xf32>
    %88 = tpu.transpose %87, [1, 0] : vector<8x128xf32> -> vector<128x8xf32>
    %89 = vector.extract_strided_slice %88 {offsets = [0, 0], sizes = [9, 8], strides = [1, 1]} : vector<128x8xf32> to vector<9x8xf32>
    %c0_22 = arith.constant 0 : index
    %c0_23 = arith.constant 0 : index
    %90 = vector.load %arg3[%c0_22, %c0_23] : memref<9x8xf32, #tpu.memory_space<vmem>>, vector<9x8xf32>
    tpu.vector_store %arg3[%c0_22, %c0_23], %89 {strides = array<i32>} : memref<9x8xf32, #tpu.memory_space<vmem>>, vector<9x8xf32>,
    return
  }
  func.func @transform_0(%arg0: i32) -> (i32, i32) {
    %c0_i32 = arith.constant 0 : i32
    %c0_i32_0 = arith.constant 0 : i32
    return %arg0, %c0_i32 : i32, i32
  }
  func.func @transform_1(%arg0: i32) -> (i32, i32) {
    %c0_i32 = arith.constant 0 : i32
    %c0_i32_0 = arith.constant 0 : i32
    return %arg0, %c0_i32 : i32, i32
  }
  func.func @transform_2(%arg0: i32) -> (i32, i32) {
    %c0_i32 = arith.constant 0 : i32
    %c0_i32_0 = arith.constant 0 : i32
    return %c0_i32, %arg0 : i32, i32
  }
}

</mosaic_0001>

<bundles_post_ra>
// kernel: tpu_custom_call.1
= control target key start
LH: loop header
LB: loop body
LE: loop exit
PB: predicated region body
PF: predicated region fallthrough
CT: control target
= control target key end

     0   :  { %7 = vsyncpa [#allocation3], 0  ;;  %s547_s0 = inlined_call_operand.hbm [shape: f32[8,256], index: 0, kind: input, shape index: {}]   ;;  %s548_s1 = inlined_call_operand.hbm [shape: f32[8,256], index: 1, kind: input, shape index: {}]   ;;  %s549_s2 = inlined_call_operand.vmem [shape: f32[9,8], index: 2, kind: output, shape index: {}]  }
   0x1   :  { %s14_s11 = sshll.u32 %s547_s0, 4  ;;  %s15_s11 = int_to_ptr.hbm [resolvable:$true] %s14_s11 }
   0x2   :  { %8 = vsyncpa [#allocation5], 0  ;;  %s436_s12 = smov [#allocation2]   ;;  %s25_s16 = sshll.u32 %s548_s1, 4  ;;  %s26_s16 = int_to_ptr.hbm [resolvable:$true] %s25_s16 }
   0x3   :  { %s16_s13 = sshll.u32 %s436_s12, 4  ;;  %s437_s17 = smov [#allocation4]   ;;  %s17_s13 = int_to_ptr.vmem [resolvable:$true] %s16_s13 }
   0x4   :  { %19 = dma.hbm_to_vmem [thread:$0]  %s15_s11, 256, %s17_s13, [#allocation3]  }
   0x5   :  { %s27_s18 = sshll.u32 %s437_s17, 4  ;;  %s28_s18 = int_to_ptr.vmem [resolvable:$true] %s27_s18 }
   0x6   :  { %30 = dma.hbm_to_vmem [thread:$0]  %s26_s16, 256, %s28_s18, [#allocation5]  }
   0x7   :  { %432 = dma.done.wait [#allocation3], 256  }
   0x8   :  { %433 = vsyncadd [#allocation3], 4294967040 }
   0x9   :  { %434 = dma.done.wait [#allocation5], 256  }
   0xa   :  { %435 = vsyncadd [#allocation5], 4294967040  ;;  %v41_v0 = vld [vmem:[#allocation4] sm:$0xff]  ;;  %v42_v1 = vld [vmem:[#allocation4 + $0x8] sm:$0xff]  ;;  %s438_s0 = smov 4   ;;  %v439_v5 = vmov 256.0   ;;  %v91_v7 = vlaneseq }
   0xb   :  { %v43_v2 = vadd.f32 %v42_v1, %v41_v0  ;;  %v470_v3 = vld [vmem:[#allocation2] sm:$0xff]  ;;  %v474_v4 = vld [vmem:[#allocation2 + $0x8] sm:$0xff]  ;;  %380 = vrcp.f32 %v439_v5  ;;  %v440_v12 = vmov 1.0   ;;  %vm67_vm8 = vcmask 31744   ;;  %s441_s1 = smov 120   ;;  %s442_s19 = smov 123  }
   0xc   :  { %87 = vrot.lane.b32.xlu1 %v470_v3, %s438_s0  ;;  %v92_v9 = vshrl.u32 %v91_v7, 7  ;;  %v94_v10 = vand.u32 127, %v91_v7  ;;  %v74_v14 = vadd.f32 %v474_v4, %v470_v3  ;;  %v77_v15 = vmul.f32 %v470_v3, %v470_v3  ;;  %s443_s20 = smov 121   ;;  %s444_s21 = smov 124  }
   0xd   :  { %44 = vadd.xlane.f32.xlu0 %v43_v2  ;;  %v78_v16 = vmul.f32 %v474_v4, %v474_v4  ;;  %vm104_vm9 = vcmask 64512   ;;  %s445_s22 = smov 125   ;;  %s446_s23 = smov 126   ;;  %vm165_vm10 = vcmask 982016   ;;  %vm181_vm11 = vcmask 990208  }
   0xe   :  { %vm95_vm0 = vcmp.lt.s32.totalorder %v92_v9, 4  ;;  %vm96_vm1 = vcmp.ge.s32.totalorder %v92_v9, %v94_v10  ;;  %vm98_vm2 = vcmp.ge.s32.totalorder %v92_v9, 4  ;;  %vm99_vm3 = vcmp.lt.s32.totalorder %v92_v9, %v94_v10  ;;  %75 = vadd.xlane.f32.xlu2 %v74_v14  ;;  %s447_s24 = smov 122   ;;  %s448_s25 = smov 127  }
   0xf   :  { %vm97_vm4 = vmand %vm95_vm0, %vm96_vm1  ;;  %v79_v18 = vadd.f32 %v78_v16, %v77_v15  ;;  %vm197_vm12 = vcmask 998400   ;;  %vm213_vm13 = vcmask 1006592   ;;  %vm229_vm14 = vcmask 1014784  }
  0x10   :  { %vm100_vm5 = vmand %vm98_vm2, %vm99_vm3  ;;  %vm245_vm15 = vcmask 1022976   ;;  %vm261_vm0 = vcmask 1031168   ;;  %vm277_vm1 = vcmask 1039360   ;;  %vm292_vm2 = vcmask 7168  }
  0x11   :  { %v381_v6 = vpop.eup %380  ;;  %vm101_vm6 = vmor %vm97_vm4, %vm100_vm5  ;;  %vm294_vm3 = vcmask 15360   ;;  %vm296_vm4 = vcmask 23552   ;;  %vm299_vm5 = vcmask 39936  }
  0x12   :  { %v47_v8 = vmul.f32 256.0, %v381_v6  ;;  %362 = vmatpush.msk.msra.mxu0 %vm101_vm6, %v440_v12  ;;  %364 = vmatpush.msk.msra.mxu1 %vm101_vm6, %v440_v12  ;;  %vm51_vm7 = vweird.f32 %v381_v6  ;;  %vm301_vm6 = vcmask 48128  }
  0x14   :  { %v48_v11 = vsub.f32 1.0, %v47_v8 }
  0x16   :  { %v49_v13 = vmul.f32 %v381_v6, %v48_v11  ;;  %80 = vadd.xlane.f32.xlu2 %v79_v18 }
  0x18   :  { %v50_v17 = vadd.f32 %v381_v6, %v49_v13 }
  0x1a   :  { %v52_v19 = vsel %vm51_vm7, %v381_v6, %v50_v17  ;;  %vm303_vm7 = vcmask 56320  }
  0x21   :  { %83 = vrot.lane.b32.xlu0 %v474_v4, %s438_s0 }
  0x7e   :  { %v88_v27 = vpop.permute.xlu1 %87 }
  0x80   :  { %v45_v20 = vpop.xlane.xlu0 %44 }
  0x81   :  { %v53_v21 = vmul.f32 %v52_v19, %v45_v20  ;;  %v76_v36 = vpop.xlane.xlu2 %75 }
  0x83   :  { %v54_v22 = vsub.f32 %v41_v0, %v53_v21  ;;  %v55_v23 = vsub.f32 %v42_v1, %v53_v21 }
  0x85   :  { %63 = vrot.lane.b32.xlu1 %v54_v22, %s438_s0  ;;  %v56_v24 = vmul.f32 %v54_v22, %v54_v22  ;;  %v57_v25 = vmul.f32 %v55_v23, %v55_v23 }
  0x87   :  { %v58_v26 = vadd.f32 %v57_v25, %v56_v24 }
  0x89   :  { %59 = vadd.xlane.f32.xlu0 %v58_v26  ;;  %v81_v38 = vpop.xlane.xlu2 %80 }
  0x8d   :  { %65 = vrot.lane.b32.xlu1 %v55_v23, %s438_s0 }
  0x93   :  { %v84_v28 = vpop.permute.xlu0 %83 }
  0x94   :  { %v90_v29 = vsel %vm67_vm8, %v84_v28, %v88_v27 }
  0x95   :  { %363 = vmatmul.msk.f32.vlgmr.msra.gmra.mxu0 %vm104_vm9, %v90_v29  ;;  %v129_v30 = vmul.f32 %v90_v29, %v90_v29 }
  0x97   :  { %365 = vmatmul.msk.f32.vlgmr.msra.gmra.mxu1 %vm104_vm9, %v129_v30 }
  0xf7   :  { %v64_v31 = vpop.permute.xlu1 %63 }
  0xf8   :  { %v490_v32 = vsel %vm67_vm8, 0.0, %v64_v31 }
  0xf9   :  { %159 = vrot.lane.b32.xlu2 %v490_v32, %s441_s1 }
  0xfc   :  { %v60_v7 = vpop.xlane.xlu0 %59 }
  0xff   :  { %v66_v33 = vpop.permute.xlu1 %65 }
 0x100   :  { %v494_v34 = vsel %vm67_vm8, %v64_v31, %v66_v33  ;;  %v73_v35 = vsel %vm67_vm8, %v66_v33, 0.0 }
 0x101   :  { %209 = vrot.lane.b32.xlu0 %v494_v34, %s442_s19  ;;  %161 = vrot.lane.b32.xlu1 %v494_v34, %s441_s1 }
 0x102   :  { %177 = vrot.lane.b32.xlu2 %v494_v34, %s443_s20 }
 0x109   :  { %163 = vrot.lane.b32.xlu1 %v73_v35, %s441_s1 }
 0x10a   :  { %225 = vrot.lane.b32.xlu2 %v494_v34, %s444_s21 }
 0x111   :  { %175 = vrot.lane.b32.xlu1 %v490_v32, %s443_s20 }
 0x112   :  { %243 = vrot.lane.b32.xlu2 %v73_v35, %s445_s22  ;;  %v125_v37 = vpop.f32.mrf.mxu0 }
 0x113   :  { %v128_v39 = vsub.f32 %v76_v36, %v125_v37  ;;  %v288_v36 = vmul.f32 %v494_v34, %v474_v4  ;;  %v287_v37 = vmul.f32 %v490_v32, %v470_v3 }
 0x114   :  { %v150_v40 = vpop.f32.mrf.mxu1 }
 0x115   :  { %v154_v41 = vmul.f32 %v128_v39, %v128_v39  ;;  %v153_v42 = vsub.f32 %v81_v38, %v150_v40  ;;  %v289_v38 = vadd.f32 %v288_v36, %v287_v37 }
 0x117   :  { %v155_v43 = vmul.f32 0.00390625, %v154_v41 }
 0x119   :  { %v503_v44 = vsub.f32 %v153_v42, %v155_v43  ;;  %179 = vrot.lane.b32.xlu1 %v73_v35, %s443_s20 }
 0x11a   :  { %257 = vrot.lane.b32.xlu2 %v494_v34, %s446_s23 }
 0x121   :  { %191 = vrot.lane.b32.xlu1 %v490_v32, %s447_s24 }
 0x122   :  { %271 = vrot.lane.b32.xlu2 %v490_v32, %s448_s25 }
 0x129   :  { %193 = vrot.lane.b32.xlu1 %v494_v34, %s447_s24 }
 0x12a   :  { %275 = vrot.lane.b32.xlu2 %v73_v35, %s448_s25 }
 0x131   :  { %195 = vrot.lane.b32.xlu1 %v73_v35, %s447_s24 }
 0x139   :  { %207 = vrot.lane.b32.xlu1 %v490_v32, %s442_s19 }
 0x141   :  { %211 = vrot.lane.b32.xlu1 %v73_v35, %s442_s19 }
 0x149   :  { %223 = vrot.lane.b32.xlu1 %v490_v32, %s444_s21 }
 0x151   :  { %227 = vrot.lane.b32.xlu1 %v73_v35, %s444_s21 }
 0x153   :  { %v160_v46 = vpop.permute.xlu2 %159 }
 0x159   :  { %239 = vrot.lane.b32.xlu1 %v490_v32, %s445_s22 }
 0x15c   :  { %v178_v54 = vpop.permute.xlu2 %177 }
 0x161   :  { %241 = vrot.lane.b32.xlu1 %v494_v34, %s445_s22 }
 0x164   :  { %v226_v17 = vpop.permute.xlu2 %225 }
 0x169   :  { %255 = vrot.lane.b32.xlu1 %v490_v32, %s446_s23 }
 0x16c   :  { %v244_v25 = vpop.permute.xlu2 %243 }
 0x171   :  { %259 = vrot.lane.b32.xlu1 %v73_v35, %s446_s23 }
 0x173   :  { %v162_v45 = vpop.permute.xlu1 %161  ;;  %v210_v9 = vpop.permute.xlu0 %209 }
 0x174   :  { %v166_v47 = vsel %vm165_vm10, %v160_v46, %v162_v45  ;;  %v258_v31 = vpop.permute.xlu2 %257 }
 0x175   :  { %v170_v50 = vmul.f32 %v166_v47, %v470_v3 }
 0x179   :  { %273 = vrot.lane.b32.xlu1 %v494_v34, %s448_s25 }
 0x17b   :  { %v164_v48 = vpop.permute.xlu1 %163 }
 0x17c   :  { %v167_v49 = vsel %vm165_vm10, %v162_v45, %v164_v48  ;;  %v272_v39 = vpop.permute.xlu2 %271 }
 0x17d   :  { %v171_v51 = vmul.f32 %v167_v49, %v474_v4 }
 0x17f   :  { %v172_v52 = vadd.f32 %v171_v51, %v170_v50 }
 0x181   :  { %173 = vadd.xlane.f32.xlu0 %v172_v52 }
 0x183   :  { %v176_v53 = vpop.permute.xlu1 %175 }
 0x184   :  { %v182_v55 = vsel %vm181_vm11, %v176_v53, %v178_v54  ;;  %v276_v47 = vpop.permute.xlu2 %275  ;;  %v306_v53 = vmul.f32 %v503_v44, %v60_v7 }
 0x185   :  { %v186_v58 = vmul.f32 %v182_v55, %v470_v3 }
 0x186   :  { %382 = vrsqrt.f32 %v306_v53 }
 0x18b   :  { %v180_v56 = vpop.permute.xlu1 %179 }
 0x18c   :  { %v183_v57 = vsel %vm181_vm11, %v178_v54, %v180_v56  ;;  %v383_v55 = vpop.eup %382  ;;  %vm313_vm11 = vweird.f32 %v306_v53 }
 0x18d   :  { %v187_v59 = vmul.f32 %v183_v57, %v474_v4  ;;  %v308_v56 = vmul.f32 %v383_v55, %v306_v53  ;;  %vm314_vm10 = vweird.f32 %v383_v55 }
 0x18f   :  { %v188_v60 = vadd.f32 %v187_v59, %v186_v58  ;;  %v309_v59 = vmul.f32 %v383_v55, %v308_v56 }
 0x191   :  { %189 = vadd.xlane.f32.xlu2 %v188_v60  ;;  %v310_v60 = vmul.f32 0.5, %v309_v59 }
 0x193   :  { %v192_v61 = vpop.permute.xlu1 %191 }
 0x19b   :  { %v194_v62 = vpop.permute.xlu1 %193 }
 0x19c   :  { %v198_v63 = vsel %vm197_vm12, %v192_v61, %v194_v62 }
 0x19d   :  { %v202_v2 = vmul.f32 %v198_v63, %v470_v3 }
 0x1a3   :  { %v196_v0 = vpop.permute.xlu1 %195 }
 0x1a4   :  { %v199_v1 = vsel %vm197_vm12, %v194_v62, %v196_v0  ;;  %vm315_vm12 = vmor %vm313_vm11, %vm314_vm10 }
 0x1a5   :  { %v203_v5 = vmul.f32 %v199_v1, %v474_v4 }
 0x1a7   :  { %v204_v6 = vadd.f32 %v203_v5, %v202_v2 }
 0x1a9   :  { %205 = vadd.xlane.f32.xlu0 %v204_v6 }
 0x1ab   :  { %v208_v8 = vpop.permute.xlu1 %207 }
 0x1ac   :  { %v214_v10 = vsel %vm213_vm13, %v208_v8, %v210_v9 }
 0x1ad   :  { %v218_v13 = vmul.f32 %v214_v10, %v470_v3 }
 0x1b3   :  { %v212_v11 = vpop.permute.xlu1 %211 }
 0x1b4   :  { %v215_v12 = vsel %vm213_vm13, %v210_v9, %v212_v11  ;;  %vm318_vm13 = vcmask 72704  }
 0x1b5   :  { %v219_v14 = vmul.f32 %v215_v12, %v474_v4 }
 0x1b7   :  { %v220_v15 = vadd.f32 %v219_v14, %v218_v13 }
 0x1b9   :  { %221 = vadd.xlane.f32.xlu2 %v220_v15 }
 0x1bb   :  { %v224_v16 = vpop.permute.xlu1 %223 }
 0x1bc   :  { %v230_v18 = vsel %vm229_vm14, %v224_v16, %v226_v17 }
 0x1bd   :  { %v234_v21 = vmul.f32 %v230_v18, %v470_v3 }
 0x1c3   :  { %v228_v19 = vpop.permute.xlu1 %227 }
 0x1c4   :  { %v231_v20 = vsel %vm229_vm14, %v226_v17, %v228_v19 }
 0x1c5   :  { %v235_v22 = vmul.f32 %v231_v20, %v474_v4 }
 0x1c7   :  { %v236_v23 = vadd.f32 %v235_v22, %v234_v21 }
 0x1c9   :  { %237 = vadd.xlane.f32.xlu0 %v236_v23 }
 0x1cb   :  { %v240_v24 = vpop.permute.xlu1 %239 }
 0x1d3   :  { %v242_v26 = vpop.permute.xlu1 %241 }
 0x1d4   :  { %v246_v27 = vsel %vm245_vm15, %v240_v24, %v242_v26  ;;  %v247_v28 = vsel %vm245_vm15, %v242_v26, %v244_v25 }
 0x1d5   :  { %v250_v29 = vmul.f32 %v246_v27, %v470_v3  ;;  %v251_v30 = vmul.f32 %v247_v28, %v474_v4 }
 0x1d7   :  { %v252_v33 = vadd.f32 %v251_v30, %v250_v29 }
 0x1d9   :  { %253 = vadd.xlane.f32.xlu0 %v252_v33 }
 0x1db   :  { %v256_v35 = vpop.permute.xlu1 %255 }
 0x1dc   :  { %v262_v40 = vsel %vm261_vm0, %v256_v35, %v258_v31 }
 0x1dd   :  { %v266_v43 = vmul.f32 %v262_v40, %v470_v3 }
 0x1e1   :  { %290 = vadd.xlane.f32.xlu0 %v289_v38 }
 0x1e3   :  { %v260_v41 = vpop.permute.xlu1 %259 }
 0x1e4   :  { %v263_v42 = vsel %vm261_vm0, %v258_v31, %v260_v41 }
 0x1e5   :  { %v267_v45 = vmul.f32 %v263_v42, %v474_v4 }
 0x1e7   :  { %v268_v46 = vadd.f32 %v267_v45, %v266_v43 }
 0x1e9   :  { %269 = vadd.xlane.f32.xlu1 %v268_v46 }
 0x1eb   :  { %v274_v48 = vpop.permute.xlu1 %273 }
 0x1ec   :  { %v278_v34 = vsel %vm277_vm1, %v272_v39, %v274_v48  ;;  %v279_v49 = vsel %vm277_vm1, %v274_v48, %v276_v47 }
 0x1ed   :  { %v282_v32 = vmul.f32 %v278_v34, %v470_v3  ;;  %v283_v50 = vmul.f32 %v279_v49, %v474_v4  ;;  %v311_v3 = vsub.f32 1.5, %v310_v60 }
 0x1ef   :  { %v284_v51 = vadd.f32 %v283_v50, %v282_v32  ;;  %v312_v2 = vmul.f32 %v383_v55, %v311_v3 }
 0x1f1   :  { %285 = vadd.xlane.f32.xlu2 %v284_v51  ;;  %v316_v11 = vsel %vm315_vm12, %v383_v55, %v312_v2 }
 0x1f4   :  { %v174_v52 = vpop.xlane.xlu0 %173 }
 0x204   :  { %v190_v58 = vpop.xlane.xlu2 %189 }
 0x205   :  { %v293_v4 = vsel %vm292_vm2, %v174_v52, %v190_v58 }
 0x21c   :  { %v206_v54 = vpop.xlane.xlu0 %205 }
 0x21d   :  { %v295_v63 = vsel %vm294_vm3, %v293_v4, %v206_v54 }
 0x22c   :  { %v222_v62 = vpop.xlane.xlu2 %221 }
 0x22d   :  { %v297_v0 = vsel %vm296_vm4, %v295_v63, %v222_v62 }
 0x23c   :  { %v238_v57 = vpop.xlane.xlu0 %237 }
 0x23d   :  { %v298_v1 = vsel %vm67_vm8, %v297_v0, %v238_v57  ;;  %vm353_vm8 = vcmask 57344  }
 0x24c   :  { %v254_v61 = vpop.xlane.xlu0 %253 }
 0x24d   :  { %v300_v5 = vsel %vm299_vm5, %v298_v1, %v254_v61 }
 0x254   :  { %v291_v8 = vpop.xlane.xlu0 %290 }
 0x25c   :  { %v270_v44 = vpop.xlane.xlu1 %269 }
 0x25d   :  { %v302_v6 = vsel %vm301_vm6, %v300_v5, %v270_v44 }
 0x264   :  { %v286_v7 = vpop.xlane.xlu2 %285 }
 0x265   :  { %v304_v9 = vsel %vm303_vm7, %v302_v6, %v286_v7 }
 0x266   :  { %v305_v10 = vsel %vm104_vm9, %v304_v9, %v291_v8 }
 0x267   :  { %v317_v12 = vmul.f32 %v316_v11, %v305_v10 }
 0x269   :  { %v319_v13 = vsel %vm318_vm13, %v317_v12, 0.0 }
 0x26a   :  { %320 = vxpose.xlu0.b32.start.end [1/1] (short) (narrow) %v319_v13, 16 }
 0x30e   :  { %v336_v14 = vpop.trf.xlu0 }
 0x30f   :  { %352 = vst.msk [vmem:[%s549_s2] sm:$0xff] %vm104_vm9, %v336_v14 }
 0x316   :  { %v337_v15 = vpop.trf.xlu0 }
 0x317   :  { %354 = vst.msk [vmem:[%s549_s2 + $0x8] sm:$0x1] %vm353_vm8, %v337_v15 }
 0x318   :  { %359 = vsyncpa [#allocation3], 1 }
 0x319   :  { %360 = vsyncpa [#allocation5], 1 }

</bundles_post_ra>
